<compile_context>
chip_gen: v6e
topology: v6e:2x2x1
jax: 0.10.0
libtpu: 0.0.40
codegen_flags: <defaults>
</compile_context>

<pallas_src>
import jax
import jax.numpy as jnp
from jax.experimental import pallas as pl
from jax.experimental.pallas import tpu as pltpu


def _adap_conv_kernel(x_ref, xtop_ref, xbot_ref, w_ref, scale_ref, bias_ref, o_ref):
    """One (batch, row-tile) step of fused conv3x3 + BN + ReLU (+ folded gate).

    x_ref    : (1, T, W*Cin)       current row tile (lane-dense)      (compute dtype)
    xtop_ref : (1, 8, W*Cin)       aligned 8-row block holding the halo row above
    xbot_ref : (1, 8, W*Cin)       aligned 8-row block holding the halo row below
    w_ref    : (3, W*Cin, W*Cout)  banded (block-Toeplitz over w) conv weights
    scale_ref: (1, W*Cout)         gate*gamma/sqrt(var+eps), tiled across W   (f32)
    bias_ref : (1, W*Cout)         gate*((b-mean)*gamma/sqrt(var+eps)+beta)   (f32)
    o_ref    : (1, T, W*Cout)      lane-dense output tile
    """
    T = x_ref.shape[1]
    r = pl.program_id(1)
    nr = pl.num_programs(1)

    main = x_ref[0]                               # (T, W*Cin)

    # Single halo rows, zero-masked at the image top/bottom border (this
    # reproduces the conv's zero padding along H).  The kw shifts and the zero
    # padding along W live in the band structure of w_ref, so no rolls and no
    # column strip stores are needed.
    top_row = xtop_ref[0, 7:8, :]                 # image row (r*T - 1)
    bot_row = xbot_ref[0, 0:1, :]                 # image row (r*T + T)
    top = jnp.where(r > 0, top_row, jnp.zeros_like(top_row))
    bot = jnp.where(r < nr - 1, bot_row, jnp.zeros_like(bot_row))

    up = jnp.concatenate([top, main[:T - 1]], axis=0)   # row t -> image row t-1
    dn = jnp.concatenate([main[1:], bot], axis=0)       # row t -> image row t+1

    # 3x3 conv == 3 GEMMs (one per kh) against banded weights; f32 accumulate.
    acc = jnp.dot(up, w_ref[0], preferred_element_type=jnp.float32)
    acc = acc + jnp.dot(main, w_ref[1], preferred_element_type=jnp.float32)
    acc = acc + jnp.dot(dn, w_ref[2], preferred_element_type=jnp.float32)

    # Folded conv-bias + BatchNorm(eval) + sigmoid gate, then ReLU -- one
    # full-lane-width unmasked store of the whole tile.
    o_ref[0] = jnp.maximum(acc * scale_ref[...] + bias_ref[...], 0.0).astype(o_ref.dtype)


def _pick_tile_h(h, requested, bytes_per_row, vmem_budget):
    """Largest multiple-of-8 divisor of h that is <= requested and whose
    double-buffered per-step footprint stays well inside the VMEM budget."""
    max_rows = max(8, (vmem_budget // 4) // max(bytes_per_row, 1))
    t = min(requested, h, max_rows)
    t -= t % 8
    while t >= 8 and h % t != 0:
        t -= 8
    return t if t >= 8 else h


def _banded_weight(conv_w, w_cols, compute_dtype):
    """(Cout, Cin, 3, 3) OIHW -> (3, W*Cin, W*Cout) block-Toeplitz GEMM rhs.

    wband[kh, w'*Cin + ci, w*Cout + co] = conv_w[co, ci, kh, w' - w + 1]
    when |w' - w| <= 1, else 0 -- folding the kw shift and the zero padding
    along W into the weight matrix.
    """
    cout, cin = conv_w.shape[0], conv_w.shape[1]
    wk = jnp.transpose(conv_w, (2, 3, 1, 0)).astype(jnp.float32)   # (kh, kw, ci, co)
    wp = jnp.arange(w_cols)[:, None, None]                         # source column w'
    wc = jnp.arange(w_cols)[None, :, None]                         # output column w
    kw = jnp.arange(3)[None, None, :]
    sel = (wp == wc + kw - 1).astype(jnp.float32)                  # (W, W, 3)
    band = jnp.einsum("pwk,hkio->hpiwo", sel, wk)                  # (3, W, Cin, W, Cout)
    return band.reshape(3, w_cols * cin, w_cols * cout).astype(compute_dtype)


def adap_conv_forward(x_nchw, conv_w, conv_b, bn_gamma, bn_beta, bn_mean,
                      bn_var, adapt_w, eps=1e-5, *, tile_h=256,
                      compute_dtype=jnp.float32):
    """adap_conv forward.  x_nchw: (B, Cin, H, W).  Returns NCHW in compute_dtype."""
    B, Cin, H, W = x_nchw.shape
    Cout = conv_w.shape[0]
    WCin, WCout = W * Cin, W * Cout
    assert H % 8 == 0, "TODO(synk): pad H to a multiple of 8 for general shapes"

    itemsize = jnp.dtype(compute_dtype).itemsize
    try:
        vmem_cap = pltpu.get_tpu_info().vmem_capacity_bytes  # 128 MiB v5e/v6e, 64 MiB v7x
    except Exception:
        vmem_cap = 64 * 1024 * 1024
    vmem_budget = int(vmem_cap * 3 // 4)

    bytes_per_row = (WCin + WCout) * itemsize
    th = _pick_tile_h(H, tile_h, bytes_per_row, vmem_budget)
    nr = H // th
    thb = th // 8
    hb_last = H // 8 - 1

    # Per-step footprint: double-buffered main/out/halo blocks + resident
    # weights + folded affine params (+1 MiB slack).  Guarded explicitly
    # instead of relying on a scoped-VMEM compile error (esp. v7x's 64 MiB).
    w_bytes = 3 * WCin * WCout * itemsize
    footprint = (2 * (th * bytes_per_row + 2 * 8 * WCin * itemsize)
                 + 2 * w_bytes + 2 * 2 * WCout * 4 + (1 << 20))
    assert footprint <= vmem_budget, (
        f"per-step VMEM footprint {footprint} exceeds budget {vmem_budget}")

    # Lane-dense layout: collapse W and Cin into the lane axis.
    # TODO(synk): the NCHW <-> lane-dense transposes exist only because the
    # module interface is NCHW; in an NHWC end-to-end pipeline they disappear.
    x_flat = jnp.transpose(x_nchw, (0, 2, 3, 1)).reshape(B, H, WCin)
    x_flat = x_flat.astype(compute_dtype)

    wband = _banded_weight(conv_w, W, compute_dtype)

    # Fold conv bias + eval-mode BatchNorm + sigmoid gate into scale/bias.
    # Exact: sigmoid(w) > 0  =>  relu(z) * g == relu(z * g).
    # TODO(synk): training-mode BatchNorm (per-batch statistics) not implemented.
    gate = jax.nn.sigmoid(adapt_w.reshape(()).astype(jnp.float32))
    inv_std = bn_gamma.astype(jnp.float32) / jnp.sqrt(bn_var.astype(jnp.float32) + eps)
    scale_c = gate * inv_std
    bias_c = gate * ((conv_b - bn_mean).astype(jnp.float32) * inv_std
                     + bn_beta.astype(jnp.float32))
    scale = jnp.tile(scale_c, W).reshape(1, WCout).astype(jnp.float32)
    bias = jnp.tile(bias_c, W).reshape(1, WCout).astype(jnp.float32)

    in_specs = [
        # current row tile (lane-dense)
        pl.BlockSpec((1, th, WCin), lambda b, r: (b, r, 0)),
        # aligned 8-row block whose LAST row is the halo row above the tile
        # (clamped at the top border; zero-masked in-kernel)
        pl.BlockSpec((1, 8, WCin),
                     lambda b, r: (b, jnp.maximum(r * thb - 1, 0), 0)),
        # aligned 8-row block whose FIRST row is the halo row below the tile
        pl.BlockSpec((1, 8, WCin),
                     lambda b, r: (b, jnp.minimum((r + 1) * thb, hb_last), 0)),
        # banded weights / folded affine params: constant index -> kept resident
        pl.BlockSpec((3, WCin, WCout), lambda b, r: (0, 0, 0)),
        pl.BlockSpec((1, WCout), lambda b, r: (0, 0)),
        pl.BlockSpec((1, WCout), lambda b, r: (0, 0)),
    ]
    # Lane-dense output: last dim W*Cout (128 in the demo) -> unmasked stores.
    out_specs = pl.BlockSpec((1, th, WCout), lambda b, r: (b, r, 0))

    out = pl.pallas_call(
        _adap_conv_kernel,
        out_shape=jax.ShapeDtypeStruct((B, H, WCout), compute_dtype),
        grid=(B, nr),
        in_specs=in_specs,
        out_specs=out_specs,
        compiler_params=pltpu.CompilerParams(
            # Independent output tiles -> both grid axes shardable across the
            # two TensorCores on v7x (B*nr >= 2 for the demo shapes).
            dimension_semantics=("parallel", "parallel"),
            # Per-generation scoped-VMEM budget (not hard-coded 32 MiB).
            vmem_limit_bytes=vmem_budget,
        ),
        # NOTE: if a trace still shows exposed DMA after retiling, add
        # pipeline_mode=pl.Buffered(3) to in_specs[0] only.
    )(x_flat, x_flat, x_flat, wband, scale, bias)

    out = out.reshape(B, H, W, Cout)
    return jnp.transpose(out, (0, 3, 1, 2))


def _reference(x_nchw, conv_w, conv_b, bn_gamma, bn_beta, bn_mean, bn_var,
               adapt_w, eps=1e-5):
    y = jax.lax.conv_general_dilated(
        x_nchw, conv_w, window_strides=(1, 1), padding=((1, 1), (1, 1)),
        dimension_numbers=("NCHW", "OIHW", "NCHW"))
    y = y + conv_b[None, :, None, None]
    y = (y - bn_mean[None, :, None, None]) / jnp.sqrt(bn_var + eps)[None, :, None, None]
    y = y * bn_gamma[None, :, None, None] + bn_beta[None, :, None, None]
    y = jnp.maximum(y, 0.0)
    return y * jax.nn.sigmoid(adapt_w)


if __name__ == "__main__":
    B, Cin, Cout, H, W = 2, 4, 8, 16, 16

    key = jax.random.PRNGKey(0)
    kx, kw_key, kb_key = jax.random.split(key, 3)
    x = jax.random.normal(kx, (B, Cin, H, W), dtype=jnp.float32)

    # Deterministic synthetic params (shapes follow nn.Conv2d / nn.BatchNorm2d).
    fan_in = Cin * 3 * 3
    bound = 1.0 / (fan_in ** 0.5)
    conv_w = jax.random.uniform(kw_key, (Cout, Cin, 3, 3), jnp.float32, -bound, bound)
    conv_b = jax.random.uniform(kb_key, (Cout,), jnp.float32, -bound, bound)
    # Non-trivial BN running stats so the epilogue fold is actually exercised.
    bn_gamma = 0.5 + 0.05 * jnp.arange(Cout, dtype=jnp.float32)
    bn_beta = 0.01 * jnp.arange(Cout, dtype=jnp.float32)
    bn_mean = 0.1 * jnp.arange(Cout, dtype=jnp.float32) - 0.3
    bn_var = 1.0 + 0.1 * jnp.arange(Cout, dtype=jnp.float32)
    adapt_w = jnp.array([0.0], jnp.float32)     # self.weight = Parameter([0.0])

    args = (x, conv_w, conv_b, bn_gamma, bn_beta, bn_mean, bn_var, adapt_w)
    ref = _reference(*args)

    # f32, row-tiled: grid (2, 2) -> exercises the row-halo path and provides
    # 4 parallel steps for v7x's 2 TensorCores.
    out = jax.block_until_ready(adap_conv_forward(*args, tile_h=8))
    assert out.shape == (B, Cout, H, W)
    assert jnp.allclose(out, ref, atol=1e-4, rtol=1e-4), "f32 tiled mismatch vs reference"

    # f32, whole-image tiles (default tile_h): small images need no row axis.
    out_full = jax.block_until_ready(adap_conv_forward(*args))
    assert jnp.allclose(out_full, ref, atol=1e-4, rtol=1e-4), "f32 full mismatch vs reference"

    # bf16 activations/weights/output (MXU-peak path on v6e/v7x), f32 accumulation.
    out_bf16 = jax.block_until_ready(
        adap_conv_forward(*args, tile_h=8, compute_dtype=jnp.bfloat16))
    assert out_bf16.dtype == jnp.bfloat16
    assert jnp.allclose(out_bf16.astype(jnp.float32), ref, atol=3e-2, rtol=3e-2), \
        "bf16 mismatch vs reference"

    print("KERNEL_OK")
</pallas_src>

<mosaic_0001>
module attributes {stable_mosaic.version = 11 : i64} {
  func.func @_adap_conv_kernel(%arg0: i32, %arg1: i32, %arg2: memref<1x8x64xf32, #tpu.memory_space<vmem>>, %arg3: memref<1x8x64xf32, #tpu.memory_space<vmem>>, %arg4: memref<1x8x64xf32, #tpu.memory_space<vmem>>, %arg5: memref<3x64x128xf32, #tpu.memory_space<vmem>>, %arg6: memref<1x128xf32, #tpu.memory_space<vmem>>, %arg7: memref<1x128xf32, #tpu.memory_space<vmem>>, %arg8: memref<1x8x128xf32, #tpu.memory_space<vmem>>) attributes {dimension_semantics = [#tpu.dimension_semantics<parallel>, #tpu.dimension_semantics<parallel>], iteration_bounds = array<i64: 2, 2>, scalar_prefetch = 0 : i64, scratch_operands = 0 : i64, tpu.core_type = #tpu.core_type<tc>, window_params = [{transform_indices = @transform_0, window_bounds = array<i64: 1, 8, 64>}, {transform_indices = @transform_1, window_bounds = array<i64: 1, 8, 64>}, {transform_indices = @transform_2, window_bounds = array<i64: 1, 8, 64>}, {pipeline_mode = #tpu.pipeline_mode<synchronous>, transform_indices = @transform_3, window_bounds = array<i64: 3, 64, 128>}, {pipeline_mode = #tpu.pipeline_mode<synchronous>, transform_indices = @transform_4, window_bounds = array<i64: 1, 128>}, {pipeline_mode = #tpu.pipeline_mode<synchronous>, transform_indices = @transform_5, window_bounds = array<i64: 1, 128>}, {transform_indices = @transform_6, window_bounds = array<i64: 1, 8, 128>}]} {
    %c0 = arith.constant 0 : index
    %c0_0 = arith.constant 0 : index
    %c0_1 = arith.constant 0 : index
    %0 = vector.load %arg2[%c0, %c0_0, %c0_1] : memref<1x8x64xf32, #tpu.memory_space<vmem>>, vector<1x8x64xf32>
    %1 = vector.shape_cast %0 : vector<1x8x64xf32> to vector<8x64xf32>
    %c0_2 = arith.constant 0 : index
    %c7 = arith.constant 7 : index
    %c0_3 = arith.constant 0 : index
    %2 = vector.load %arg3[%c0_2, %c7, %c0_3] : memref<1x8x64xf32, #tpu.memory_space<vmem>>, vector<1x1x64xf32>
    %3 = vector.shape_cast %2 : vector<1x1x64xf32> to vector<1x64xf32>
    %c0_4 = arith.constant 0 : index
    %c0_5 = arith.constant 0 : index
    %c0_6 = arith.constant 0 : index
    %4 = vector.load %arg4[%c0_4, %c0_5, %c0_6] : memref<1x8x64xf32, #tpu.memory_space<vmem>>, vector<1x1x64xf32>
    %5 = vector.shape_cast %4 : vector<1x1x64xf32> to vector<1x64xf32>
    %c0_i32 = arith.constant 0 : i32
    %6 = arith.cmpi sgt, %arg1, %c0_i32 : i32
    %cst = arith.constant 0.000000e+00 : f32
    %7 = vector.broadcast %cst : f32 to vector<1x64xf32>
    %8 = arith.select %6, %3, %7 : vector<1x64xf32>
    %c1_i32 = arith.constant 1 : i32
    %9 = arith.cmpi slt, %arg1, %c1_i32 : i32
    %cst_7 = arith.constant 0.000000e+00 : f32
    %10 = vector.broadcast %cst_7 : f32 to vector<1x64xf32>
    %11 = arith.select %9, %5, %10 : vector<1x64xf32>
    %12 = vector.extract_strided_slice %1 {offsets = [0, 0], sizes = [7, 64], strides = [1, 1]} : vector<8x64xf32> to vector<7x64xf32>
    %13 = tpu.concatenate %8, %12 in 0 : vector<1x64xf32>, vector<7x64xf32> -> vector<8x64xf32>
    %14 = vector.extract_strided_slice %1 {offsets = [1, 0], sizes = [7, 64], strides = [1, 1]} : vector<8x64xf32> to vector<7x64xf32>
    %15 = tpu.concatenate %14, %11 in 0 : vector<7x64xf32>, vector<1x64xf32> -> vector<8x64xf32>
    %c0_8 = arith.constant 0 : index
    %c0_9 = arith.constant 0 : index
    %c0_10 = arith.constant 0 : index
    %16 = vector.load %arg5[%c0_8, %c0_9, %c0_10] : memref<3x64x128xf32, #tpu.memory_space<vmem>>, vector<1x64x128xf32>
    %17 = vector.shape_cast %16 : vector<1x64x128xf32> to vector<64x128xf32>
    %cst_11 = arith.constant dense<0.000000e+00> : vector<8x128xf32>
    %18 = tpu.matmul %13, %17, %cst_11 {dimension_numbers = #tpu.dot_dimension_numbers<[1], [0], [0], [1], [0, 0, 1, 1], [], []>} : vector<8x64xf32>, vector<64x128xf32>, vector<8x128xf32> -> vector<8x128xf32>
    %c1 = arith.constant 1 : index
    %c0_12 = arith.constant 0 : index
    %c0_13 = arith.constant 0 : index
    %19 = vector.load %arg5[%c1, %c0_12, %c0_13] : memref<3x64x128xf32, #tpu.memory_space<vmem>>, vector<1x64x128xf32>
    %20 = vector.shape_cast %19 : vector<1x64x128xf32> to vector<64x128xf32>
    %cst_14 = arith.constant dense<0.000000e+00> : vector<8x128xf32>
    %21 = tpu.matmul %1, %20, %cst_14 {dimension_numbers = #tpu.dot_dimension_numbers<[1], [0], [0], [1], [0, 0, 1, 1], [], []>} : vector<8x64xf32>, vector<64x128xf32>, vector<8x128xf32> -> vector<8x128xf32>
    %22 = arith.addf %18, %21 : vector<8x128xf32>
    %c2 = arith.constant 2 : index
    %c0_15 = arith.constant 0 : index
    %c0_16 = arith.constant 0 : index
    %23 = vector.load %arg5[%c2, %c0_15, %c0_16] : memref<3x64x128xf32, #tpu.memory_space<vmem>>, vector<1x64x128xf32>
    %24 = vector.shape_cast %23 : vector<1x64x128xf32> to vector<64x128xf32>
    %cst_17 = arith.constant dense<0.000000e+00> : vector<8x128xf32>
    %25 = tpu.matmul %15, %24, %cst_17 {dimension_numbers = #tpu.dot_dimension_numbers<[1], [0], [0], [1], [0, 0, 1, 1], [], []>} : vector<8x64xf32>, vector<64x128xf32>, vector<8x128xf32> -> vector<8x128xf32>
    %26 = arith.addf %22, %25 : vector<8x128xf32>
    %c0_18 = arith.constant 0 : index
    %c0_19 = arith.constant 0 : index
    %27 = vector.load %arg6[%c0_18, %c0_19] : memref<1x128xf32, #tpu.memory_space<vmem>>, vector<1x128xf32>
    %28 = vector.broadcast %27 : vector<1x128xf32> to vector<8x128xf32>
    %29 = arith.mulf %26, %28 : vector<8x128xf32>
    %c0_20 = arith.constant 0 : index
    %c0_21 = arith.constant 0 : index
    %30 = vector.load %arg7[%c0_20, %c0_21] : memref<1x128xf32, #tpu.memory_space<vmem>>, vector<1x128xf32>
    %31 = vector.broadcast %30 : vector<1x128xf32> to vector<8x128xf32>
    %32 = arith.addf %29, %31 : vector<8x128xf32>
    %cst_22 = arith.constant 0.000000e+00 : f32
    %33 = vector.broadcast %cst_22 : f32 to vector<8x128xf32>
    %34 = arith.maximumf %32, %33 : vector<8x128xf32>
    %c0_23 = arith.constant 0 : index
    %c0_24 = arith.constant 0 : index
    %c0_25 = arith.constant 0 : index
    %35 = vector.load %arg8[%c0_23, %c0_24, %c0_25] : memref<1x8x128xf32, #tpu.memory_space<vmem>>, vector<1x8x128xf32>
    %36 = vector.shape_cast %35 : vector<1x8x128xf32> to vector<8x128xf32>
    %37 = vector.shape_cast %34 : vector<8x128xf32> to vector<1x8x128xf32>
    tpu.vector_store %arg8[%c0_23, %c0_24, %c0_25], %37 {strides = array<i32>} : memref<1x8x128xf32, #tpu.memory_space<vmem>>, vector<1x8x128xf32>,
    return
  }
  func.func @transform_0(%arg0: i32, %arg1: i32) -> (i32, i32, i32) {
    %c0_i32 = arith.constant 0 : i32
    %c0_i32_0 = arith.constant 0 : i32
    return %arg0, %arg1, %c0_i32 : i32, i32, i32
  }
  func.func @transform_1(%arg0: i32, %arg1: i32) -> (i32, i32, i32) {
    %c1_i32 = arith.constant 1 : i32
    %0 = arith.muli %arg1, %c1_i32 : i32
    %c1_i32_0 = arith.constant 1 : i32
    %1 = arith.subi %0, %c1_i32_0 : i32
    %c0_i32 = arith.constant 0 : i32
    %2 = arith.maxsi %1, %c0_i32 : i32
    %c0_i32_1 = arith.constant 0 : i32
    %c0_i32_2 = arith.constant 0 : i32
    return %arg0, %2, %c0_i32_1 : i32, i32, i32
  }
  func.func @transform_2(%arg0: i32, %arg1: i32) -> (i32, i32, i32) {
    %c1_i32 = arith.constant 1 : i32
    %0 = arith.addi %arg1, %c1_i32 : i32
    %c1_i32_0 = arith.constant 1 : i32
    %1 = arith.muli %0, %c1_i32_0 : i32
    %c1_i32_1 = arith.constant 1 : i32
    %2 = arith.minsi %1, %c1_i32_1 : i32
    %c0_i32 = arith.constant 0 : i32
    %c0_i32_2 = arith.constant 0 : i32
    return %arg0, %2, %c0_i32 : i32, i32, i32
  }
  func.func @transform_3(%arg0: i32, %arg1: i32) -> (i32, i32, i32) {
    %c0_i32 = arith.constant 0 : i32
    %c0_i32_0 = arith.constant 0 : i32
    %c0_i32_1 = arith.constant 0 : i32
    %c0_i32_2 = arith.constant 0 : i32
    return %c0_i32, %c0_i32_0, %c0_i32_1 : i32, i32, i32
  }
  func.func @transform_4(%arg0: i32, %arg1: i32) -> (i32, i32) {
    %c0_i32 = arith.constant 0 : i32
    %c0_i32_0 = arith.constant 0 : i32
    %c0_i32_1 = arith.constant 0 : i32
    return %c0_i32, %c0_i32_0 : i32, i32
  }
  func.func @transform_5(%arg0: i32, %arg1: i32) -> (i32, i32) {
    %c0_i32 = arith.constant 0 : i32
    %c0_i32_0 = arith.constant 0 : i32
    %c0_i32_1 = arith.constant 0 : i32
    return %c0_i32, %c0_i32_0 : i32, i32
  }
  func.func @transform_6(%arg0: i32, %arg1: i32) -> (i32, i32, i32) {
    %c0_i32 = arith.constant 0 : i32
    %c0_i32_0 = arith.constant 0 : i32
    return %arg0, %arg1, %c0_i32 : i32, i32, i32
  }
}

</mosaic_0001>

<bundles_post_ra>
// kernel: tpu_custom_call.1
= control target key start
LH: loop header
LB: loop body
LE: loop exit
PB: predicated region body
PF: predicated region fallthrough
CT: control target
= control target key end

     0   :  { %s1845_s0 = inlined_call_operand.hbm [shape: f32[2,16,64], index: 0, kind: input, shape index: {}]   ;;  %s1846_s1 = inlined_call_operand.hbm [shape: f32[2,16,64], index: 1, kind: input, shape index: {}]   ;;  %s1847_s2 = inlined_call_operand.hbm [shape: f32[2,16,64], index: 2, kind: input, shape index: {}]   ;;  %s1848_s3 = inlined_call_operand.hbm [shape: f32[3,64,128], index: 3, kind: input, shape index: {}]   ;;  %s1849_s4 = inlined_call_operand.vmem [shape: f32[1,128], index: 4, kind: input, shape index: {}]   ;;  %s1850_s5 = inlined_call_operand.vmem [shape: f32[1,128], index: 5, kind: input, shape index: {}]   ;;  %s1851_s6 = inlined_call_operand.hbm [shape: f32[2,16,128], index: 6, kind: output, shape index: {}]  }
   0x1   :  { %1869 = sst [smem:[#allocation25_spill]] %s1846_s1 }
   0x2   :  { %1870 = sst [smem:[#allocation26_spill]] %s1848_s3 }
   0x3   :  { %1871 = sst [smem:[#allocation27_spill]] %s1849_s4 }
   0x4   :  { %1872 = sst [smem:[#allocation28_spill]] %s1850_s5 }
   0x5   :  { %1873 = sst [smem:[#allocation29_spill]] %s1851_s6 }
   0x6   :  { %11 = vsyncpa [#allocation3], 0 }
   0x7   :  { %13 = vsyncpa [#allocation3 + $0x1], 0 }
   0x8   :  { %14 = vsyncpa [#allocation6], 0 }
   0x9   :  { %16 = vsyncpa [#allocation6 + $0x1], 0 }
   0xa   :  { %17 = vsyncpa [#allocation9], 0 }
   0xb   :  { %18 = vsyncpa [#allocation4], 0 }
   0xc   :  { %20 = vsyncpa [#allocation4 + $0x1], 0  ;;  %s1434_s21 = smov 0   ;;  %s1436_s22 = smov 0  }
   0xd   :  { %s1438_s23 = smov 0   ;;  %s1440_s24 = smov 0  }
   0xe   :  { %s1442_s25 = smov 0   ;;  %s1444_s26 = smov 0  }
   0xf   :  { %s1446_s27 = smov 0   ;;  %s1448_s28 = smov 0  }
  0x10   :  { %s1450_s29 = smov 0   ;;  %s1452_s30 = smov 0  }
  0x11   :  { %s1454_s7 = smov 0   ;;  %s1456_s8 = smov 0  }
  0x12   :  { %s1458_s9 = smov 0   ;;  %s1460_s10 = smov 0  }
  0x13 LB: > { %1874 = sst [smem:[#allocation16_spill]] %s1352_s25  ;;  %s1503_s11 = sadd.s32 4294967295, %s1388_s10   ;;  %s1388_s10 = sphi %s1460_s10, %s26_s10   ;;  %s1384_s9 = sphi %s1458_s9, %s1940_s9   ;;  %s1380_s8 = sphi %s1456_s8, %s1939_s8   ;;  %s1376_s7 = sphi %s1454_s7, %s1938_s7   ;;  %s1372_s30 = sphi %s1452_s30, %s1937_s30   ;;  %s1368_s29 = sphi %s1450_s29, %s1927_s29   ;;  %s1364_s28 = sphi %s1448_s28, %s1936_s28   ;;  %s1360_s27 = sphi %s1446_s27, %s1935_s27   ;;  %s1356_s26 = sphi %s1444_s26, %s1934_s26   ;;  %s1352_s25 = sphi %s1442_s25, %s1933_s25   ;;  %s1348_s24 = sphi %s1440_s24, %s1924_s24   ;;  %s1344_s23 = sphi %s1438_s23, %s1932_s23   ;;  %s1340_s22 = sphi %s1436_s22, %s1931_s22   ;;  %s1336_s21 = sphi %s1434_s21, %s1930_s21  }
  0x14   : > { %1875 = sst [smem:[#allocation17_spill]] %s1368_s29  ;;  %s35_s12 = sadd.s32 1, %s1380_s8 }
  0x15   : > { %1876 = sst [smem:[#allocation18_spill]] %s1372_s30  ;;  %p36_p0 = scmp.ge.s32.totalorder %s35_s12, 2 }
  0x16   : > { %1877 = sst [smem:[#allocation19_spill]] %s1376_s7  ;;  %s38_s13 = sadd.s32 1, %s1384_s9 }
  0x17   : > { %p1861_p1 = scmp.eq.s32.totalorder %s1388_s10, 0  ;;  %p1862_p2 = scmp.eq.s32.totalorder %s1503_s11, 0 }
  0x18   : > { %s1942_s12 = smov (%p36_p0, %s35_s12), 0  ;;  %s1944_s13 = smov (!%p36_p0, %s38_s13), %s1384_s9 }
  0x19   : > { %1878 = sst [smem:[#allocation20_spill]] %s1942_s12  ;;  %s43_s14 = ssub.s32 %s1380_s8, %s1942_s12 }
  0x1a   : > { %p40_p3 = scmp.ge.s32.totalorder %s1944_s13, 2  ;;  %s81_s15 = sadd.s32 1, %s1356_s26 }
  0x1b   : > { %p88_p4 = scmp.ne.s32.totalorder %s1356_s26, %s1352_s25  ;;  %p94_p6 = scmp.ne.s32.totalorder %s1352_s25, %s1348_s24 }
  0x1c   : > { %s1946_s13 = smov (%p40_p3, %s1944_s13), 0  ;;  %p1860_p10 = scmp.lt.s32.totalorder %s1388_s10, 4 }
  0x1d   : > { %1879 = sst [smem:[#allocation21_spill]] %s1946_s13  ;;  %s1519_s16 = ssub.s32 %s1384_s9, %s1946_s13 }
  0x1e   : > { %s1522_s17 = sor.u32 %s43_s14, %s1519_s16  ;;  %p1530_p7 = por %p88_p4, %p1861_p1 }
  0x1f   : > { %p1536_p8 = por %p94_p6, %p1862_p2  ;;  %p1859_p9 = scmp.eq.s32.totalorder %s1519_s16, 0 }
  0x20   : > { %s282_s14 = sand.u32 1, %s1388_s10   ;;  %s284_s12 = sand.u32 1, %s1356_s26  }
  0x21   : > { %s1881_s19 = scalar_select %p1536_p8, 1, 0 }
  0x22   : > { %s1547_s13 = scalar_select %p1859_p9, %s1356_s26, %s81_s15  }
  0x23   : > { %1882 = sst [smem:[#allocation22_spill]] %s1881_s19  ;;  %s860_s24 = sshll.u32 %s284_s12, 3 }
  0x24   : > { %1883 = sst [smem:[#allocation23_spill]] %s1547_s13  ;;  %s1864_s6 = sshll.u32 %s1384_s9, 8 }
  0x25   : > { %s1884_s1 = sld [smem:[#allocation25_spill]]  ;;  %s286_s30 = scalar_lea.vmem [#allocation5], %s860_s24 }
  0x26   : > { %s298_s25 = sshll.u32 %s286_s30, 4  ;;  %p1560_p11 = pnand %p1860_p10, %p1530_p7  ;;  %s299_s25 = int_to_ptr.vmem [resolvable:$true] %s298_s25 }
  0x27   : > { %s1564_s15 = scalar_lea.sflag [#allocation6], %s282_s14 }
  0x28   : > { %p1120_p13 = pneg %p1560_p11 }
  0x2b   : > { %s296_s7 = scalar_lea.hbm %s1884_s1, %s1864_s6 }
  0x2c   : > { %s1118_s20 = scalar_lea.hbm %s296_s7, 128  ;;  %p1124_p4 = scmp.lt.s32.totalorder %s296_s7, %s1884_s1 }
  0x2d   : > { %p1119_p12 = scmp.ne.s32.totalorder %s296_s7, %s1118_s20 }
  0x2f   : > { %p1121_p0 = pnand %p1120_p13, %p1119_p12 }
  0x31   : > { %p1122_p3 = pneg %p1121_p0 }
  0x33   : > { %p1127_p6 = pnand %p1124_p4, %p1122_p3 }
  0x35   : > { %1130 = shalt.err (!%p1127_p6)
}
  0x36   : > { %s1131_s30 = scalar_lea.vmem %s299_s25, 128  ;;  %s1390_s12 = smov [#allocation5]  }
  0x37   : > { %p1132_p7 = scmp.ne.s32.totalorder %s299_s25, %s1131_s30  ;;  %s1136_s18 = sshll.u32 %s1390_s12, 4  ;;  %s1137_s18 = int_to_ptr.vmem [resolvable:$false] %s1136_s18 }
  0x38   : > { %s1138_s14 = scalar_lea.vmem %s1137_s18, 256  ;;  %p1139_p1 = scmp.lt.s32.totalorder %s299_s25, %s1137_s18 }
  0x39   : > { %p1134_p9 = pnand %p1132_p7, %p1120_p13  ;;  %p1140_p5 = scmp.lt.s32.totalorder %s1138_s14, %s1131_s30 }
  0x3b   : > { %p1135_p10 = pneg %p1134_p9  ;;  %p1141_p2 = por %p1140_p5, %p1139_p1 }
  0x3d   : > { %p1142_p8 = pnand %p1141_p2, %p1135_p10 }
  0x3f   : > { %1145 = shalt.err (!%p1142_p8)
}
  0x40   : > { %989 = dma.hbm_to_vmem [thread:$0]  (!%p1560_p11), %s296_s7, 128, %s299_s25, %s1564_s15  }
  0x41   : > { %p854_p12 = scmp.ge.s32.totalorder %s1388_s10, 1  ;;  %p230_p9 = scmp.lt.s32.totalorder %s1388_s10, 5 }
  0x42   : > { %s1391_s20 = smov [#allocation8]   ;;  %p1887_p2 = scmp.eq.s32.totalorder %s1503_s11, 0 }
  0x43   : > { %s242_s24 = sshll.u32 %s1391_s20, 4  ;;  %p1576_p13 = pnand %p854_p12, %p230_p9  ;;  %s243_s24 = int_to_ptr.vmem [resolvable:$true] %s242_s24 }
  0x44   : > { %s851_s5 = sadd.s32 4294967294, %s1388_s10   ;;  %s47_s25 = sadd.s32 1, %s1368_s29 }
  0x45   : > { %p979_p1 = pneg %p1576_p13  ;;  %s1157_s7 = scalar_lea.vmem %s243_s24, 3072 }
  0x46   : > { %p1158_p10 = scmp.ne.s32.totalorder %s243_s24, %s1157_s7  ;;  %p1165_p3 = scmp.lt.s32.totalorder %s243_s24, %s243_s24 }
  0x47   : > { %p1584_p5 = pnand %p979_p1, %p1887_p2  ;;  %p1166_p4 = scmp.lt.s32.totalorder %s1157_s7, %s1157_s7 }
  0x49   : > { %p1148_p8 = pneg %p1584_p5  ;;  %p1167_p6 = por %p1166_p4, %p1165_p3 }
  0x4b   : > { %p1160_p11 = pnand %p1158_p10, %p1148_p8 }
  0x4d   : > { %p1161_p0 = pneg %p1160_p11 }
  0x4f   : > { %p1168_p7 = pnand %p1167_p6, %p1161_p0 }
  0x51   : > { %1171 = shalt.err (!%p1168_p7)
}
  0x52   : > { %s1392_s30 = smov 128   ;;  %s1393_s12 = smov 8  }
  0x53   : > { %s1889_s3 = sld [smem:[#allocation26_spill]]  ;;  %p1890_p12 = scmp.eq.s32.totalorder %s1522_s17, 0 }
  0x54   : > { %p54_p9 = scmp.ne.s32.totalorder %s1368_s29, %s1364_s28  ;;  %p60_p1 = scmp.ne.s32.totalorder %s1364_s28, %s1360_s27 }
  0x55   : > { %s1600_s20 = scalar_select %p1890_p12, %s1368_s29, %s47_s25  }
  0x56   : > { %p217_p2 = scmp.eq.s32.totalorder %s1503_s11, 3  ;;  %p223_p8 = scmp.eq.s32.totalorder %s851_s5, 3 }
  0x57   : > { %1891 = sst [smem:[#allocation24_spill]] %s1600_s20  ;;  %p1892_p10 = scmp.eq.s32.totalorder %s1388_s10, 0 }
  0x58   : > { %p1893_p0 = scmp.eq.s32.totalorder %s1503_s11, 0  ;;  %p1615_p4 = por %p217_p2, %p54_p9 }
  0x59   : > { %982 = dma.hbm_to_vmem [thread:$0]  (!%p1584_p5), %s1889_s3, 3072, %s243_s24, [#allocation9], %s1392_s30, %s1392_s30, %s1393_s12  }
  0x5a   : > { %p56_p11 = por %p1892_p10, %p54_p9  ;;  %p1611_p3 = por %p1893_p0, %p60_p1 }
  0x5b   : > { %s1895_s19 = scalar_select %p1615_p4, 1, 0 }
  0x5c   : > { %s1894_s7 = scalar_select %p1611_p3, 1, 0 }
  0x5d   : > { %p1619_p5 = por %p223_p8, %p60_p1  ;;  %s262_s24 = sand.u32 1, %s1368_s29  }
  0x5e   : > { %s1897_s25 = sshll.u32 %s1384_s9, 1  ;;  %s857_s12 = sshll.u32 %s262_s24, 3 }
  0x5f   : > { %s1896_s17 = scalar_select %p1619_p5, 1, 0 }
  0x60   : > { %s271_s30 = sadd.s32 %s1380_s8, %s1897_s25  ;;  %s266_s1 = scalar_lea.vmem [#allocation2], %s857_s12 }
  0x61   : > { %s859_s5 = sshll.u32 %s271_s30, 7  ;;  %s275_s3 = sshll.u32 %s266_s1, 4  ;;  %s276_s3 = int_to_ptr.vmem [resolvable:$true] %s275_s3 }
  0x62   : > { %s273_s6 = scalar_lea.hbm %s1845_s0, %s859_s5  ;;  %p1898_p6 = scmp.lt.s32.totalorder %s1388_s10, 4 }
  0x63   : > { %s263_s13 = scalar_lea.sflag [#allocation3], %s262_s24  ;;  %s1185_s29 = scalar_lea.vmem %s276_s3, 128 }
  0x64   : > { %p1632_p7 = pnand %p1898_p6, %p56_p11  ;;  %p1186_p9 = scmp.ne.s32.totalorder %s276_s3, %s1185_s29 }
  0x65   : > { %s1394_s25 = smov [#allocation2]  }
  0x66   : > { %p1174_p12 = pneg %p1632_p7  ;;  %s1190_s30 = sshll.u32 %s1394_s25, 4  ;;  %s1191_s30 = int_to_ptr.vmem [resolvable:$false] %s1190_s30 }
  0x67   : > { %s1192_s5 = scalar_lea.vmem %s1191_s30, 256  ;;  %p1193_p8 = scmp.lt.s32.totalorder %s276_s3, %s1191_s30 }
  0x68   : > { %p1188_p1 = pnand %p1186_p9, %p1174_p12  ;;  %p1194_p10 = scmp.lt.s32.totalorder %s1192_s5, %s1185_s29 }
  0x6a   : > { %p1189_p2 = pneg %p1188_p1  ;;  %p1195_p0 = por %p1194_p10, %p1193_p8 }
  0x6c   : > { %p1196_p5 = pnand %p1195_p0, %p1189_p2 }
  0x6e   : > { %1199 = shalt.err (!%p1196_p5)
}
  0x6f   : > { %986 = dma.hbm_to_vmem [thread:$0]  (!%p1632_p7), %s273_s6, 128, %s276_s3, %s263_s13  }
  0x70   : > { %s115_s1 = sadd.s32 1, %s1344_s23  ;;  %p122_p11 = scmp.ne.s32.totalorder %s1344_s23, %s1340_s22 }
  0x71   : > { %p128_p6 = scmp.ne.s32.totalorder %s1340_s22, %s1336_s21  ;;  %s307_s29 = sand.u32 1, %s1344_s23  }
  0x72   : > { %p1900_p5 = scmp.eq.s32.totalorder %s1388_s10, 0  ;;  %p1901_p9 = scmp.eq.s32.totalorder %s1503_s11, 0 }
  0x73   : > { %s864_s24 = sshll.u32 %s307_s29, 3  ;;  %s1903_s12 = sshll.u32 %s1384_s9, 8 }
  0x74   : > { %p124_p12 = por %p122_p11, %p1900_p5  ;;  %p1650_p1 = por %p128_p6, %p1901_p9 }
  0x75   : > { %s1332_s18 = sadd.s32 128, %s1903_s12  ;;  %s309_s14 = scalar_lea.vmem [#allocation7], %s864_s24 }
  0x76   : > { %s1902_s20 = scalar_select %p1650_p1, 1, 0 }
  0x77   : > { %s321_s25 = sshll.u32 %s309_s14, 4  ;;  %p1904_p2 = scmp.eq.s32.totalorder %s1519_s16, 0  ;;  %s322_s25 = int_to_ptr.vmem [resolvable:$true] %s321_s25 }
  0x78   : > { %s319_s21 = scalar_lea.hbm %s1847_s2, %s1332_s18  ;;  %p1905_p7 = scmp.lt.s32.totalorder %s1388_s10, 4 }
  0x79   : > { %s1659_s30 = scalar_select %p1904_p2, %s1344_s23, %s115_s1  }
  0x7a   : > { %p1666_p8 = pnand %p1905_p7, %p124_p12  ;;  %s1200_s5 = scalar_lea.hbm %s319_s21, 128 }
  0x7b   : > { %p1201_p10 = scmp.ne.s32.totalorder %s319_s21, %s1200_s5  ;;  %s1205_s29 = scalar_lea.hbm %s1847_s2, 512 }
  0x7c   : > { %p1202_p0 = pneg %p1666_p8  ;;  %p1207_p5 = scmp.lt.s32.totalorder %s1205_s29, %s1200_s5 }
  0x7e   : > { %p1203_p11 = pnand %p1202_p0, %p1201_p10 }
  0x80   : > { %p1204_p6 = pneg %p1203_p11 }
  0x82   : > { %p1209_p9 = pnand %p1207_p5, %p1204_p6 }
  0x84   : > { %1212 = shalt.err (!%p1209_p9)
}
  0x85   : > { %s1213_s24 = scalar_lea.vmem %s322_s25, 128  ;;  %s1395_s12 = smov [#allocation7]  }
  0x86   : > { %p1214_p2 = scmp.ne.s32.totalorder %s322_s25, %s1213_s24  ;;  %s1218_s18 = sshll.u32 %s1395_s12, 4  ;;  %s1219_s18 = int_to_ptr.vmem [resolvable:$false] %s1218_s18 }
  0x87   : > { %s1220_s14 = scalar_lea.vmem %s1219_s18, 256  ;;  %p1221_p4 = scmp.lt.s32.totalorder %s322_s25, %s1219_s18 }
  0x88   : > { %p1216_p12 = pnand %p1214_p2, %p1202_p0  ;;  %p1222_p1 = scmp.lt.s32.totalorder %s1220_s14, %s1213_s24 }
  0x8a   : > { %p1217_p7 = pneg %p1216_p12  ;;  %p1223_p3 = por %p1222_p1, %p1221_p4 }
  0x8c   : > { %p1224_p10 = pnand %p1223_p3, %p1217_p7 }
  0x8e   : > { %1227 = shalt.err (!%p1224_p10)
}
  0x8f   : > { %992 = dma.hbm_to_vmem [thread:$0]  (!%p1666_p8), %s319_s21, 128, %s322_s25, %s1564_s15  }
  0x90   : > { %330 = sbr.rel (%p1576_p13) target bundleno = 415 (0x19f), region = 44  ;;  %s1681_s3 = sand.u32 (!%p1576_p13), 1, %s1364_s28  }
  0x91   : > { %s868_s6 = sshll.u32 (!%p1576_p13), %s1681_s3, 3  ;;  %s333_s5 = scalar_lea.sflag (!%p1576_p13), [#allocation3], %s1681_s3 }
  0x92   : > { %s1687_s16 = scalar_lea.vmem (!%p1576_p13), [#allocation2], %s868_s6  ;;  %p1907_p3 = scmp.ne.s32.totalorder (!%p1576_p13), %s1894_s7, 0 }
  0x95   : > { %1311 = dma.done.wait (%p1907_p3), %s333_s5, 128  }
  0x96   : > { %1313 = vsyncadd (%p1907_p3), %s333_s5, 4294967168  ;;  %s1908_s15 = sld [smem:[#allocation16_spill]]  ;;  %s341_s25 = sand.u32 1, %s1503_s11  }
  0x97   : > { %s1909_s4 = sld [smem:[#allocation22_spill]]  ;;  %s342_s1 = scalar_lea.sflag [#allocation6], %s341_s25 }
  0x9c   : > { %s343_s21 = sand.u32 1, %s1908_s15  }
  0x9d   : > { %s1695_s13 = sshll.u32 %s343_s21, 3  ;;  %p1910_p13 = scmp.ne.s32.totalorder %s1909_s4, 0 }
  0x9e   : > { %s345_s29 = scalar_lea.vmem [#allocation5], %s1695_s13 }
  0x9f   : > { %1315 = dma.done.wait (%p1910_p13), %s342_s1, 128  }
  0xa0   : > { %1317 = vsyncadd (%p1910_p13), %s342_s1, 4294967168  ;;  %s352_s24 = sand.u32 1, %s1340_s22   ;;  %p1911_p4 = scmp.ne.s32.totalorder %s1902_s20, 0 }
  0xa1   : > { %s1703_s7 = sshll.u32 %s352_s24, 3 }
  0xa2   : > { %s354_s12 = scalar_lea.vmem [#allocation7], %s1703_s7 }
  0xa3   : > { %1319 = dma.done.wait (%p1911_p4), %s342_s1, 128  }
  0xa4   : > { %1321 = vsyncadd (%p1911_p4), %s342_s1, 4294967168  ;;  %p1912_p1 = scmp.eq.s32.totalorder %s1503_s11, 0 }
  0xa6   : > { %1323 = dma.done.wait (%p1912_p1), [#allocation9], 3072   ;;  %p1913_p8 = pmov %p1912_p1 }
  0xa7   : > { %s1914_s18 = sld [smem:[#allocation18_spill]]  ;;  %v1396_v0 = vmov 0.0   ;;  %vm1397_vm0 = vmmov 0   ;;  %v444_v1 = vld [vmem:[#allocation8 + $0x78] sm:$0xff]  ;;  %v443_v3 = vld [vmem:[#allocation8 + $0x70] sm:$0xff]  ;;  %v442_v5 = vld [vmem:[#allocation8 + $0x68] sm:$0xff] }
  0xa8   : > { %1325 = vsyncadd (%p1913_p8), [#allocation9], 4294964224  ;;  %910 = vmatprep.subr.mxu0 %v1396_v0  ;;  %929 = vmatprep.subr.mxu1 %v1396_v0  ;;  %v435_v2 = vld [vmem:[#allocation8 + $0x38] sm:$0xff]  ;;  %v434_v4 = vld [vmem:[#allocation8 + $0x30] sm:$0xff]  ;;  %vm419_vm2 = vcmask 1040384   ;;  %vm445_vm3 = vcmask 523264  }
  0xa9   : > { %926 = vmatprep.mubr.msk.f32.mxu0 %vm1397_vm0, %v1396_v0  ;;  %945 = vmatprep.mubr.msk.f32.mxu1 %vm1397_vm0, %v1396_v0  ;;  %v433_v6 = vld [vmem:[#allocation8 + $0x28] sm:$0xff]  ;;  %v441_v7 = vld [vmem:[#allocation8 + $0x60] sm:$0xff]  ;;  %v440_v10 = vld [vmem:[#allocation8 + $0x58] sm:$0xff]  ;;  %s1917_s14 = sld [smem:[#allocation19_spill]]  ;;  %vm426_vm5 = vcmask 1046528   ;;  %s396_s24 = scalar_lea.vmem [#allocation10], %s868_s6 }
  0xaa   : > { %911 = vmatpush3.msra.mxu0 %v444_v1  ;;  %930 = vmatpush3.msra.mxu1 %v435_v2  ;;  %v432_v8 = vld [vmem:[#allocation8 + $0x20] sm:$0xff]  ;;  %v431_v11 = vld [vmem:[#allocation8 + $0x18] sm:$0xff]  ;;  %v439_v13 = vld [vmem:[#allocation8 + $0x50] sm:$0xff]  ;;  %s1918_s4 = sld [smem:[#allocation27_spill]]  ;;  %s708_s7 = sshll.u32 %s396_s24, 4  ;;  %s709_s7 = int_to_ptr.vmem [resolvable:$true] %s708_s7 }
  0xab   : > { %912 = vmatprep.subr.mxu0 %v1396_v0  ;;  %931 = vmatprep.subr.mxu1 %v1396_v0  ;;  %v1728_v12 = vld [vmem:[%s1687_s16] sm:$0xff]  ;;  %v404_v15 = vld [vmem:[%s345_s29 + $0x7] sm:$0x1]  ;;  %s1919_s1 = sld [smem:[#allocation28_spill]]  ;;  %s693_s16 = scalar_lea.sflag [#allocation4], %s1681_s3 }
  0xac   : > { %913 = vmatpush3.msra.mxu0 %v443_v3  ;;  %932 = vmatpush3.msra.mxu1 %v434_v4  ;;  %v430_v14 = vld [vmem:[#allocation8 + $0x10] sm:$0xff]  ;;  %v438_v17 = vld [vmem:[#allocation8 + $0x48] sm:$0xff]  ;;  %v417_v19 = vrot.slane %v1728_v12, 7  ;;  %v437_v21 = vld [vmem:[#allocation8 + $0x40] sm:$0xff]  ;;  %v421_v33 = vrot.slane %v1728_v12, 1  ;;  %p1921_p5 = scmp.ne.s32.totalorder %s1895_s19, 0 }
  0xad   : > { %p406_p0 = scmp.gt.s32.totalorder %s1914_s18, 0  ;;  %914 = vmatprep.subr.mxu0 %v1396_v0  ;;  %933 = vmatprep.subr.mxu1 %v1396_v0  ;;  %p411_p11 = scmp.lt.s32.totalorder %s1914_s18, 1  ;;  %v429_v18 = vld [vmem:[#allocation8 + $0x8] sm:$0xff]  ;;  %v428_v22 = vld [vmem:[#allocation8] sm:$0xff]  ;;  %v599_v24 = vld [vmem:[#allocation8 + $0xb8] sm:$0xff] }
  0xae   : > { %915 = vmatpush3.msra.mxu0 %v442_v5  ;;  %934 = vmatpush3.msra.mxu1 %v433_v6  ;;  %v598_v25 = vld [vmem:[#allocation8 + $0xb0] sm:$0xff]  ;;  %v597_v27 = vld [vmem:[#allocation8 + $0xa8] sm:$0xff]  ;;  %v596_v29 = vld [vmem:[#allocation8 + $0xa0] sm:$0xff] }
  0xaf   : > { %s407_s11 = scalar_select %p406_p0, 1, 0  ;;  %916 = vmatprep.subr.mxu0 %v1396_v0  ;;  %935 = vmatprep.subr.mxu1 %v1396_v0  ;;  %v405_v28 = vld [vmem:[%s354_s12] sm:$0x1]  ;;  %v593_v35 = vld [vmem:[#allocation8 + $0x88] sm:$0xff]  ;;  %v592_v36 = vld [vmem:[#allocation8 + $0x80] sm:$0xff] }
  0xb0   : > { %917 = vmatpush3.msra.mxu0 %v441_v7  ;;  %936 = vmatpush3.msra.mxu1 %v432_v8  ;;  %s412_s20 = scalar_select %p411_p11, 1, 0  ;;  %v595_v30 = vld [vmem:[#allocation8 + $0x98] sm:$0xff]  ;;  %v594_v32 = vld [vmem:[#allocation8 + $0x90] sm:$0xff] }
  0xb1   : > { %v408_v9 = vstv %s407_s11  ;;  %918 = vmatprep.subr.mxu0 %v1396_v0  ;;  %937 = vmatprep.subr.mxu1 %v1396_v0  ;;  %s879_s5 = sshll.u32 %s1917_s14, 1  ;;  %v876_v44 = vld [vmem:[%s1918_s4] ss:$0 sm:$0xff] }
  0xb2   : > { %vm1734_vm1 = vcmp.eq.s32.totalorder %v408_v9, 1  ;;  %919 = vmatpush3.msra.mxu0 %v440_v10  ;;  %938 = vmatpush3.msra.mxu1 %v431_v11  ;;  %v413_v26 = vstv %s412_s20  ;;  %s704_s25 = sadd.s32 %s1914_s18, %s879_s5  ;;  %v877_v46 = vld [vmem:[%s1919_s1] ss:$0 sm:$0xff]  ;;  %s1920_s20 = sld [smem:[#allocation29_spill]] }
  0xb3   : > { %920 = vmatprep.subr.mxu0 %v1396_v0  ;;  %939 = vmatprep.subr.mxu1 %v1396_v0  ;;  %v410_v20 = vsel %vm1734_vm1, %v404_v15, 0.0  ;;  %vm414_vm4 = vcmp.eq.s32.totalorder %v413_v26, 1  ;;  %s880_s29 = sshll.u32 %s704_s25, 7  ;;  %s1228_s18 = scalar_lea.vmem %s709_s7, 128 }
  0xb4   : > { %921 = vmatpush3.msra.mxu0 %v439_v13  ;;  %940 = vmatpush3.msra.mxu1 %v430_v14  ;;  %v420_v23 = vsel %vm419_vm2, %v410_v20, %v417_v19  ;;  %v415_v31 = vsel %vm414_vm4, %v405_v28, 0.0  ;;  %p1229_p6 = scmp.ne.s32.totalorder %s709_s7, %s1228_s18  ;;  %s1398_s5 = smov [#allocation10]  }
  0xb5   : > { %922 = vmatprep.subr.mxu0 %v1396_v0  ;;  %941 = vmatprep.subr.mxu1 %v1396_v0  ;;  %v424_v34 = vrot.slane %v415_v31, 1  ;;  %s1232_s15 = sshll.u32 %s1398_s5, 4  ;;  %s1233_s15 = int_to_ptr.vmem [resolvable:$false] %s1232_s15 }
  0xb6   : > { %923 = vmatpush3.msra.mxu0 %v438_v17  ;;  %942 = vmatpush3.msra.mxu1 %v429_v18  ;;  %p1230_p9 = pnand %p1229_p6, %p1921_p5  ;;  %s1234_s4 = scalar_lea.vmem %s1233_s15, 256 }
  0xb7   : > { %924 = vmatprep.subr.mxu0 %v1396_v0  ;;  %943 = vmatprep.subr.mxu1 %v1396_v0  ;;  %v427_v37 = vsel %vm426_vm5, %v421_v33, %v424_v34  ;;  %p1235_p12 = scmp.lt.s32.totalorder %s709_s7, %s1233_s15  ;;  %p1236_p7 = scmp.lt.s32.totalorder %s1234_s4, %s1228_s18 }
  0xb8   : > { %925 = vmatpush3.msra.mxu0 %v437_v21  ;;  %944 = vmatpush3.msra.mxu1 %v428_v22  ;;  %s706_s14 = scalar_lea.hbm %s1920_s20, %s880_s29  ;;  %p1231_p2 = pneg %p1230_p9 }
  0xb9   : > { %927 = vmatmul.mubr.msk.f32.vlgmr.msra.gmra.mxu0 %vm445_vm3, %v1728_v12  ;;  %948 = vmatprep.subr.mxu0 %v1396_v0  ;;  %p1237_p10 = por %p1236_p7, %p1235_p12 }
  0xba   : > { %946 = vmatmul.mubr.msk.f32.vlgmr.msra.gmra.mxu1 %vm445_vm3, %v420_v23  ;;  %949 = vmatpush3.msra.mxu0 %v599_v24 }
  0xbb   : > { %950 = vmatprep.subr.mxu0 %v1396_v0  ;;  %964 = vmatprep.mubr.msk.f32.mxu0 %vm1397_vm0, %v1396_v0  ;;  %p1238_p3 = pnand %p1237_p10, %p1231_p2 }
  0xbc   : > { %951 = vmatpush3.msra.mxu0 %v598_v25 }
  0xbd   : > { %952 = vmatprep.subr.mxu0 %v1396_v0 }
  0xbe   : > { %953 = vmatpush3.msra.mxu0 %v597_v27 }
  0xbf   : > { %954 = vmatprep.subr.mxu0 %v1396_v0 }
  0xc0   : > { %955 = vmatpush3.msra.mxu0 %v596_v29 }
  0xc1   : > { %956 = vmatprep.subr.mxu0 %v1396_v0 }
  0xc2   : > { %957 = vmatpush3.msra.mxu0 %v595_v30 }
  0xc3   : > { %958 = vmatprep.subr.mxu0 %v1396_v0 }
  0xc4   : > { %959 = vmatpush3.msra.mxu0 %v594_v32 }
  0xc5   : > { %960 = vmatprep.subr.mxu0 %v1396_v0 }
  0xc6   : > { %961 = vmatpush3.msra.mxu0 %v593_v35 }
  0xc7   : > { %962 = vmatprep.subr.mxu0 %v1396_v0 }
  0xc8   : > { %963 = vmatpush3.msra.mxu0 %v592_v36 }
  0xc9   : > { %965 = vmatmul.mubr.msk.f32.vlgmr.msra.gmra.mxu0 %vm445_vm3, %v427_v37 }
 0x179   : > { %v514_v38 = vpop.f32.mrf.mxu0 }
 0x17a   : > { %v587_v39 = vpop.f32.mrf.mxu1 }
 0x17b   : > { %v928_v40 = vpop.f32.mrf.mxu0  ;;  %v588_v42 = vadd.f32 %v587_v39, %v514_v38 }
 0x17c   : > { %v947_v41 = vpop.f32.mrf.mxu1 }
 0x189   : > { %v669_v43 = vpop.f32.mrf.mxu0 }
 0x18a   : > { %v673_v45 = vadd.f32 %v669_v43, %v588_v42 }
 0x18b   : > { %v966_v47 = vpop.f32.mrf.mxu0 }
 0x18c   : > { %v681_v48 = vmul.f32 %v876_v44, %v673_v45 }
 0x18e   : > { %v689_v49 = vadd.f32 %v877_v46, %v681_v48 }
 0x190   : > { %v690_v50 = vmax.f32 %v689_v49, 0.0 }
 0x192   : > { %691 = vst [vmem:[%s396_s24] sm:$0xff] %v690_v50 }
 0x193   : > { %1241 = shalt.err (!%p1238_p3)
}
 0x194   : > { %s1242_s6 = scalar_lea.hbm %s706_s14, 128  ;;  %s1246_s21 = scalar_lea.hbm %s1920_s20, 512 }
 0x195   : > { %p1243_p13 = scmp.ne.s32.totalorder %s706_s14, %s1242_s6  ;;  %p1247_p8 = scmp.lt.s32.totalorder %s706_s14, %s1920_s20 }
 0x196   : > { %p1248_p0 = scmp.lt.s32.totalorder %s1246_s21, %s1242_s6 }
 0x197   : > { %p1244_p4 = pnand %p1243_p13, %p1921_p5 }
 0x198   : > { %p1249_p11 = por %p1248_p0, %p1247_p8 }
 0x199   : > { %p1245_p1 = pneg %p1244_p4 }
 0x19b   : > { %p1250_p6 = pnand %p1249_p11, %p1245_p1 }
 0x19d   : > { %1253 = shalt.err (!%p1250_p6)
}
 0x19e   : > { %977 = dma.vmem_to_hbm [thread:$0]  (%p1921_p5), %s709_s7, 128, %s706_s14, %s693_s16  }
 0x19f PF: > { %p1000_p9 = scmp.ge.s32.totalorder %s1388_s10, 2  ;;  %s720_s29 = sand.u32 1, %s1360_s27  }
 0x1a0   : > { %p1922_p2 = scmp.ne.s32.totalorder %s1896_s17, 0  ;;  %s721_s24 = scalar_lea.sflag [#allocation4], %s720_s29 }
 0x1a2   : > { %p994_p12 = pnand %p1000_p9, %p1922_p2 }
 0x1a4   : > { %p995_p7 = pneg %p994_p12 }
 0x1a6   : > { %1327 = dma.done.wait (%p995_p7), %s721_s24, 128  }
 0x1a7   : > { %1329 = vsyncadd (%p995_p7), %s721_s24, 4294967168  ;;  %s26_s10 = sadd.s32 1, %s1388_s10   ;;  %s1924_s24 = sld [smem:[#allocation16_spill]] }
 0x1a8   : > { %p1798_p10 = scmp.ge.s32.totalorder %s26_s10, 6   ;;  %s1925_s19 = sld [smem:[#allocation23_spill]] }
 0x1a9   : > { %s1926_s7 = sld [smem:[#allocation17_spill]]  ;;  %s1930_s21 = smov %s1340_s22 }
 0x1aa   : > { %s1927_s29 = sld [smem:[#allocation24_spill]]  ;;  %s1931_s22 = smov %s1344_s23 }
 0x1ab   : > { %s1928_s17 = sld [smem:[#allocation20_spill]]  ;;  %s1932_s23 = smov %s1659_s30 }
 0x1ac   : > { %s1929_s11 = sld [smem:[#allocation21_spill]]  ;;  %s1933_s25 = smov %s1356_s26 }
 0x1ad   : > { %s1935_s27 = smov %s1364_s28  ;;  %s1937_s30 = smov %s1380_s8 }
 0x1ae   : > { %s1934_s26 = smov %s1925_s19  ;;  %25 = sbr.rel (!%p1798_p10) target bundleno = 19 (0x13), region = 119 }
 0x1af   : > { %s1936_s28 = smov %s1926_s7  ;;  %s1938_s7 = smov %s1384_s9 }
 0x1b1   : > { %s1939_s8 = smov %s1928_s17 }
 0x1b2   : > { %s1940_s9 = smov %s1929_s11 }
 0x1b3   :  { %726 = vsyncpa [#allocation3], 1 }
 0x1b4   :  { %728 = vsyncpa [#allocation3 + $0x1], 1 }
 0x1b5   :  { %729 = vsyncpa [#allocation6], 1 }
 0x1b6   :  { %731 = vsyncpa [#allocation6 + $0x1], 1 }
 0x1b7   :  { %732 = vsyncpa [#allocation9], 1 }
 0x1b8   :  { %733 = vsyncpa [#allocation4], 1 }
 0x1b9   :  { %735 = vsyncpa [#allocation4 + $0x1], 1 }

</bundles_post_ra>
